<compile_context>
chip_gen: v7x
topology: tpu7x:2x2x1
jax: 0.10.0
libtpu: 0.0.40
codegen_flags: <defaults>
</compile_context>

<pallas_src>
import jax
import jax.numpy as jnp
from jax.experimental import pallas as pl
from jax.experimental.pallas import tpu as pltpu


def classifier_kernel(x_ref, w_ref, o_ref):
    # Single fused MXU matmul: out = x @ W_folded
    #   x_ref: [TB, F]   (batch tile, features on lanes)
    #   w_ref: [F,  H1]  (pre-folded, pre-transposed weight: K on sublanes, N on lanes)
    #   o_ref: [TB, H1]  (true output width, no lane padding)
    # jnp.dot on 2-D operands lowers to the canonical contraction
    # dimension_numbers=(((1,), (0,)), ((), ())) -- the native MXU feed.
    o_ref[...] = jnp.dot(
        x_ref[...], w_ref[...], preferred_element_type=jnp.float32
    ).astype(o_ref.dtype)


def prepare_classifier_weights(w1, w2):
    """One-time (model-load) weight prep.

    Valid ONLY because both Linears are bias-free with no intermediate
    activation:  fc2(fc1(x)) = x @ (w2 @ w1)^T  exactly (up to f32 rounding
    from re-association).

    w1: [H0, F]  (PyTorch nn.Linear [out, in] layout)
    w2: [H1, H0]
    returns W_folded: [F, H1]  ([K, N] layout for the MXU, N on lanes)
    """
    return jnp.matmul(w2, w1).T


def _round_up(v, m):
    return ((v + m - 1) // m) * m


def _pick_batch_tile(B, block_b, F, H1, itemsize):
    """Pick the batch tile: sublane-tileable, megacore-friendly, VMEM-safe."""
    tb = min(block_b, B)
    if tb < B:
        tb = max(8, (tb // 8) * 8)  # tiled case: keep a multiple of 8 sublanes
    # v7x megacore: ensure >= 2 grid steps when the batch is big enough to split.
    if B >= 16 and pl.cdiv(B, tb) < 2:
        tb = max(8, _round_up(pl.cdiv(B, 2), 8))
    # VMEM working set per grid step (bytes):
    #   2*tb*F   (x, double-buffered)  +  2*F*H1 (weight, double-buffered)
    # + 2*tb*H1  (out, double-buffered)
    budget = 12 * 1024 * 1024  # headroom under v5e's 16 MiB default scoped VMEM

    def working_set(t):
        return (2 * t * F + 2 * F * H1 + 2 * t * H1) * itemsize

    while tb > 8 and working_set(tb) > budget:
        tb = max(8, _round_up(tb // 2, 8))
    return tb


def classifier_forward(x, w_folded, *, block_b=512):
    """Forward of `classifier`: fc2(fc1(x)), both Linears bias-free.

    x:        [B, F]   activations
    w_folded: [F, H1]  output of prepare_classifier_weights (done once at load)
    """
    B, F = x.shape
    H1 = w_folded.shape[1]
    itemsize = x.dtype.itemsize

    tb = _pick_batch_tile(B, block_b, F, H1, itemsize)
    grid = (pl.cdiv(B, tb),)

    cost = pl.CostEstimate(
        flops=2 * B * F * H1,
        transcendentals=0,
        bytes_accessed=(x.size * itemsize
                        + w_folded.size * w_folded.dtype.itemsize
                        + B * H1 * itemsize),
    )

    return pl.pallas_call(
        classifier_kernel,
        out_shape=jax.ShapeDtypeStruct((B, H1), x.dtype),
        grid_spec=pltpu.PrefetchScalarGridSpec(
            num_scalar_prefetch=0,
            grid=grid,
            in_specs=[
                # batch tile of activations (pipelined over the grid)
                pl.BlockSpec((tb, F), lambda i: (i, 0)),
                # folded weight: constant block index -> resident across steps
                pl.BlockSpec((F, H1), lambda i: (0, 0)),
            ],
            # true [B, H1] output: no lane padding, no post-kernel slice
            out_specs=pl.BlockSpec((tb, H1), lambda i: (i, 0)),
        ),
        compiler_params=pltpu.CompilerParams(
            dimension_semantics=("parallel",)),  # batch axis megacore-shardable
        cost_estimate=cost,
    )(x, w_folded)


if __name__ == "__main__":
    # Small shapes consistent with the module: batch=8, in_features=32, hidden=[128, 2]
    B, IN_FEATURES = 8, 32
    HIDDEN = [128, 2]

    key = jax.random.PRNGKey(0)
    kx, k1, k2 = jax.random.split(key, 3)

    x = jax.random.normal(kx, (B, IN_FEATURES), dtype=jnp.float32)
    # Deterministic synthetic weights (PyTorch nn.Linear weight layout: [out, in])
    bound1 = 1.0 / (IN_FEATURES ** 0.5)
    bound2 = 1.0 / (HIDDEN[0] ** 0.5)
    w1 = jax.random.uniform(k1, (HIDDEN[0], IN_FEATURES), dtype=jnp.float32,
                            minval=-bound1, maxval=bound1)
    w2 = jax.random.uniform(k2, (HIDDEN[1], HIDDEN[0]), dtype=jnp.float32,
                            minval=-bound2, maxval=bound2)

    # One-time weight prep (model load / deployment time), hoisted out of the
    # per-forward path.
    w_folded = jax.block_until_ready(prepare_classifier_weights(w1, w2))

    out = classifier_forward(x, w_folded)
    out = jax.block_until_ready(out)

    # Pure-JAX reference of the PyTorch module: fc2(fc1(x)), no biases, no activation.
    ref = (x @ w1.T) @ w2.T
    assert out.shape == (B, HIDDEN[1]), out.shape
    assert jnp.allclose(out, ref, atol=1e-4, rtol=1e-4), "mismatch vs reference"

    print("KERNEL_OK")
</pallas_src>

<mosaic_0001>
module attributes {stable_mosaic.version = 11 : i64} {
  func.func @classifier_kernel(%arg0: i32, %arg1: memref<8x32xf32, #tpu.memory_space<vmem>>, %arg2: memref<32x2xf32, #tpu.memory_space<vmem>>, %arg3: memref<8x2xf32, #tpu.memory_space<vmem>>) attributes {dimension_semantics = [#tpu.dimension_semantics<parallel>], iteration_bounds = array<i64: 1>, scalar_prefetch = 0 : i64, scratch_operands = 0 : i64, tpu.core_type = #tpu.core_type<tc>, window_params = [{transform_indices = @transform_0, window_bounds = array<i64: 8, 32>}, {pipeline_mode = #tpu.pipeline_mode<synchronous>, transform_indices = @transform_1, window_bounds = array<i64: 32, 2>}, {transform_indices = @transform_2, window_bounds = array<i64: 8, 2>}]} {
    %c0 = arith.constant 0 : index
    %c0_0 = arith.constant 0 : index
    %0 = vector.load %arg1[%c0, %c0_0] : memref<8x32xf32, #tpu.memory_space<vmem>>, vector<8x32xf32>
    %c0_1 = arith.constant 0 : index
    %c0_2 = arith.constant 0 : index
    %1 = vector.load %arg2[%c0_1, %c0_2] : memref<32x2xf32, #tpu.memory_space<vmem>>, vector<32x2xf32>
    %cst = arith.constant dense<0.000000e+00> : vector<8x2xf32>
    %2 = tpu.matmul %0, %1, %cst {dimension_numbers = #tpu.dot_dimension_numbers<[1], [0], [0], [1], [0, 0, 1, 1], [], []>} : vector<8x32xf32>, vector<32x2xf32>, vector<8x2xf32> -> vector<8x2xf32>
    %c0_3 = arith.constant 0 : index
    %c0_4 = arith.constant 0 : index
    %3 = vector.load %arg3[%c0_3, %c0_4] : memref<8x2xf32, #tpu.memory_space<vmem>>, vector<8x2xf32>
    tpu.vector_store %arg3[%c0_3, %c0_4], %2 {strides = array<i32>} : memref<8x2xf32, #tpu.memory_space<vmem>>, vector<8x2xf32>,
    return
  }
  func.func @transform_0(%arg0: i32) -> (i32, i32) {
    %c0_i32 = arith.constant 0 : i32
    %c0_i32_0 = arith.constant 0 : i32
    return %arg0, %c0_i32 : i32, i32
  }
  func.func @transform_1(%arg0: i32) -> (i32, i32) {
    %c0_i32 = arith.constant 0 : i32
    %c0_i32_0 = arith.constant 0 : i32
    %c0_i32_1 = arith.constant 0 : i32
    return %c0_i32, %c0_i32_0 : i32, i32
  }
  func.func @transform_2(%arg0: i32) -> (i32, i32) {
    %c0_i32 = arith.constant 0 : i32
    %c0_i32_0 = arith.constant 0 : i32
    return %arg0, %c0_i32 : i32, i32
  }
}

</mosaic_0001>

<bundles_post_ra>
// kernel: tpu_custom_call.1
= control target key start
LH: loop header
LB: loop body
LE: loop exit
PB: predicated region body
PF: predicated region fallthrough
CT: control target
= control target key end

     0   :  { %v122_v0 = vmov 0.0|0.0   ;;  %vm123_vm0 = vmmov 0   ;;  %v124_v4 = vmov 0.0   ;;  %vm16_vm1 = vcmask 261120   ;;  %s158_s1 = inlined_call_operand.vmem [shape: f32[32,2], index: 1, kind: input, shape index: {}]   ;;  %s159_s0 = inlined_call_operand.vmem [shape: f32[8,32], index: 0, kind: input, shape index: {}]   ;;  %s160_s2 = inlined_call_operand.vmem [shape: f32[8,2], index: 2, kind: output, shape index: {}]  }
   0x1   :  { %113 = vmatprep.subr.bf16.mxu0 %v122_v0  ;;  %v12_v1 = vld [vmem:[%s158_s1] sm:$0xff]  ;;  %v13_v2 = vld [vmem:[%s158_s1 + $0x8] sm:$0xff]  ;;  %v14_v3 = vld [vmem:[%s158_s1 + $0x10] sm:$0xff]  ;;  %110 = vmatprep.mubr.msk.f32.mxu0 %vm123_vm0, %v124_v4  ;;  %vm90_vm2 = vcmask 15360  }
   0x2   :  { %v114_v5 = vpack.c.bf16 %v13_v2, %v12_v1  ;;  %v15_v6 = vld [vmem:[%s158_s1 + $0x18] sm:$0xff]  ;;  %v11_v8 = vld [vmem:[%s159_s0] sm:$0xff] }
   0x3   :  { %v117_v7 = vpack.c.bf16 %v15_v6, %v14_v3 }
   0x4   :  { %115 = vmatpush3.bf16.msra.mxu0 %v114_v5 }
   0x5   :  { %116 = vmatprep.subr.bf16.mxu0 %v122_v0 }
   0x8   :  { %118 = vmatpush3.bf16.msra.mxu0 %v117_v7 }
   0xb   :  { %111 = vmatmul.mubr.msk.f32.vlgmr.msra.gmra.mrb[0].mxu0 %vm16_vm1, %v11_v8 }
  0xde   :  { %v86_v9 = vpop.f32.mrb[0].mxu0 }
  0xdf   :  { %91 = vst.msk [vmem:[%s160_s2] sm:$0xff] %vm90_vm2, %v86_v9  ;;  %v112_v10 = vpop.f32.mrb[1].mxu0 }

</bundles_post_ra>
